<compile_context>
chip_gen: v7x
topology: tpu7x:2x2x1
jax: 0.10.0
libtpu: 0.0.40
codegen_flags: <defaults>
</compile_context>

<pallas_src>
import jax
import jax.numpy as jnp
from jax.experimental import pallas as pl
from jax.experimental.pallas import tpu as pltpu


def make_pairs(num_fields):
    row, col = [], []
    for i in range(num_fields - 1):
        for j in range(i + 1, num_fields):
            row.append(i)
            col.append(j)
    return row, col


def _round_up(x, m):
    return ((x + m - 1) // m) * m


def inner_product_network(x, *, b_tile=None):
    """Pallas TPU implementation of InnerProductNetwork.forward."""
    batch, num_fields, embed_dim = x.shape
    num_pairs = num_fields * (num_fields - 1) // 2
    out_dtype = x.dtype
    itemsize = jnp.dtype(out_dtype).itemsize

    # Degenerate cases: no field pairs / empty batch.
    if num_pairs == 0 or batch == 0:
        return jnp.zeros((batch, num_pairs), dtype=out_dtype)

    # ---- VMEM budget (generation aware, conservative fallback) -----------
    try:
        vmem_cap = int(pltpu.get_tpu_info().vmem_capacity_bytes)
    except Exception:
        vmem_cap = 64 * 1024 * 1024  # v7x-sized conservative fallback
    # double-buffered working set <= min(VMEM/4, 32 MiB) -> safe on v5e/v6e/v7x
    budget = min(max(vmem_cap // 4, 8 * 1024 * 1024), 32 * 1024 * 1024)

    def working_set(bt):
        # (F, D, bt) input block + (P, bt) output block, double-buffered.
        in_tile = num_fields * _round_up(embed_dim, 8) * bt * itemsize
        out_tile = _round_up(num_pairs, 8) * bt * itemsize
        return 2 * (in_tile + out_tile)

    # ---- choose the batch tile (lane axis -> multiple of 128) ------------
    if b_tile is None:
        b_tile = 2048
        while b_tile > 128 and working_set(b_tile) > budget:
            b_tile //= 2
        if batch > 128:
            # At least 2 grid steps so both v7x TensorCores get work.
            b_tile = min(b_tile, _round_up(-(-batch // 2), 128))
    assert b_tile % 128 == 0 and b_tile > 0, \
        "b_tile must be a positive multiple of 128"
    # Don't pad tiny batches up to a huge tile (also for user-supplied tiles).
    b_tile = min(b_tile, _round_up(batch, 128))

    batch_pad = _round_up(batch, b_tile)
    xp = x
    if batch_pad != batch:
        xp = jnp.pad(x, ((0, batch_pad - batch), (0, 0), (0, 0)))

    # Batch-on-lanes layout: (F, D, batch_pad).  Pad rows are zeros, so their
    # pair products are zero and get sliced off below.
    xt = jnp.transpose(xp, (1, 2, 0))

    # Guard for very large F*D: always leave room for one double-buffered tile.
    vmem_limit = int(max(32 * 1024 * 1024, 2 * working_set(b_tile)))

    # ---- kernel -----------------------------------------------------------
    def kernel(x_ref, o_ref):
        # x_ref: (F, D, b_tile)  -- batch tile on lanes, embed on sublanes
        # o_ref: (P, b_tile)
        p = 0
        for i in range(num_fields - 1):
            a = x_ref[i]                                   # (D, b_tile)
            for j in range(i + 1, num_fields):
                prod = (a * x_ref[j]).astype(jnp.float32)  # full-vreg VPU mults
                s = jnp.sum(prod, axis=0, keepdims=True)   # sublane reduce -> (1, b_tile)
                o_ref[p:p + 1, :] = s.astype(o_ref.dtype)  # direct row store
                p += 1

    # ---- pallas_call ------------------------------------------------------
    grid = (batch_pad // b_tile,)
    out_t = pl.pallas_call(
        kernel,
        out_shape=jax.ShapeDtypeStruct((num_pairs, batch_pad), out_dtype),
        grid_spec=pl.GridSpec(
            grid=grid,
            in_specs=[
                pl.BlockSpec((num_fields, embed_dim, b_tile),
                             lambda b: (0, 0, b)),
            ],
            out_specs=pl.BlockSpec((num_pairs, b_tile), lambda b: (0, b)),
        ),
        compiler_params=pltpu.CompilerParams(
            dimension_semantics=("parallel",),
            vmem_limit_bytes=vmem_limit,
        ),
        cost_estimate=pl.CostEstimate(
            flops=2 * batch_pad * num_pairs * embed_dim,
            transcendentals=0,
            bytes_accessed=(batch_pad * num_fields * embed_dim * itemsize
                            + batch_pad * num_pairs * itemsize),
        ),
    )(xt)

    # Back to the PyTorch layout (batch, num_pairs); drop pad rows.
    return out_t.T[:batch]


def inner_product_network_ref(x):
    """Pure-JAX reference mirroring the PyTorch forward."""
    num_fields = x.shape[1]
    row, col = make_pairs(num_fields)
    if len(row) == 0:
        return jnp.zeros((x.shape[0], 0), dtype=x.dtype)
    return jnp.sum(x[:, jnp.array(row)] * x[:, jnp.array(col)], axis=2)


if __name__ == "__main__":
    key = jax.random.PRNGKey(0)
    k1, k2, k3 = jax.random.split(key, 3)

    # Case 1: the canonical small PNN shape (8 fields -> 28 pairs).
    b1, f1, d1 = 64, 8, 32
    x1 = jax.random.normal(k1, (b1, f1, d1), dtype=jnp.float32)
    out1 = jax.block_until_ready(inner_product_network(x1))
    ref1 = inner_product_network_ref(x1)
    assert out1.shape == (b1, f1 * (f1 - 1) // 2)
    assert jnp.allclose(out1, ref1, atol=1e-5, rtol=1e-5)

    # Case 2: batch not a multiple of the tile, odd field/embed sizes (padding path).
    b2, f2, d2 = 10, 5, 16
    x2 = jax.random.normal(k2, (b2, f2, d2), dtype=jnp.float32)
    out2 = jax.block_until_ready(inner_product_network(x2))
    ref2 = inner_product_network_ref(x2)
    assert out2.shape == (b2, f2 * (f2 - 1) // 2)
    assert jnp.allclose(out2, ref2, atol=1e-5, rtol=1e-5)

    # Case 3: explicit tile so the 1-D grid actually pipelines (3 steps).
    b3 = 384
    x3 = jax.random.normal(k3, (b3, f1, d1), dtype=jnp.float32)
    out3 = jax.block_until_ready(inner_product_network(x3, b_tile=128))
    ref3 = inner_product_network_ref(x3)
    assert out3.shape == (b3, f1 * (f1 - 1) // 2)
    assert jnp.allclose(out3, ref3, atol=1e-5, rtol=1e-5)

    print("KERNEL_OK")
</pallas_src>

<mosaic_0001>
module attributes {stable_mosaic.version = 11 : i64} {
  func.func @kernel(%arg0: i32, %arg1: memref<8x32x128xf32, #tpu.memory_space<vmem>>, %arg2: memref<28x128xf32, #tpu.memory_space<vmem>>) attributes {dimension_semantics = [#tpu.dimension_semantics<parallel>], iteration_bounds = array<i64: 1>, scalar_prefetch = 0 : i64, scratch_operands = 0 : i64, tpu.core_type = #tpu.core_type<tc>, window_params = [{transform_indices = @transform_0, window_bounds = array<i64: 8, 32, 128>}, {transform_indices = @transform_1, window_bounds = array<i64: 28, 128>}]} {
    %c0 = arith.constant 0 : index
    %c0_0 = arith.constant 0 : index
    %c0_1 = arith.constant 0 : index
    %0 = vector.load %arg1[%c0, %c0_0, %c0_1] : memref<8x32x128xf32, #tpu.memory_space<vmem>>, vector<1x32x128xf32>
    %1 = vector.shape_cast %0 : vector<1x32x128xf32> to vector<32x128xf32>
    %c1 = arith.constant 1 : index
    %c0_2 = arith.constant 0 : index
    %c0_3 = arith.constant 0 : index
    %2 = vector.load %arg1[%c1, %c0_2, %c0_3] : memref<8x32x128xf32, #tpu.memory_space<vmem>>, vector<1x32x128xf32>
    %3 = vector.shape_cast %2 : vector<1x32x128xf32> to vector<32x128xf32>
    %4 = arith.mulf %1, %3 : vector<32x128xf32>
    %cst = arith.constant dense<0.000000e+00> : vector<128xf32>
    %5 = vector.multi_reduction <add>, %4, %cst [0] : vector<32x128xf32> to vector<128xf32>
    %6 = vector.shape_cast %5 : vector<128xf32> to vector<1x128xf32>
    %c0_4 = arith.constant 0 : index
    %c0_5 = arith.constant 0 : index
    %7 = vector.load %arg2[%c0_4, %c0_5] : memref<28x128xf32, #tpu.memory_space<vmem>>, vector<1x128xf32>
    tpu.vector_store %arg2[%c0_4, %c0_5], %6 {strides = array<i32>} : memref<28x128xf32, #tpu.memory_space<vmem>>, vector<1x128xf32>,
    %c2 = arith.constant 2 : index
    %c0_6 = arith.constant 0 : index
    %c0_7 = arith.constant 0 : index
    %8 = vector.load %arg1[%c2, %c0_6, %c0_7] : memref<8x32x128xf32, #tpu.memory_space<vmem>>, vector<1x32x128xf32>
    %9 = vector.shape_cast %8 : vector<1x32x128xf32> to vector<32x128xf32>
    %10 = arith.mulf %1, %9 : vector<32x128xf32>
    %cst_8 = arith.constant dense<0.000000e+00> : vector<128xf32>
    %11 = vector.multi_reduction <add>, %10, %cst_8 [0] : vector<32x128xf32> to vector<128xf32>
    %12 = vector.shape_cast %11 : vector<128xf32> to vector<1x128xf32>
    %c1_9 = arith.constant 1 : index
    %c0_10 = arith.constant 0 : index
    %13 = vector.load %arg2[%c1_9, %c0_10] : memref<28x128xf32, #tpu.memory_space<vmem>>, vector<1x128xf32>
    tpu.vector_store %arg2[%c1_9, %c0_10], %12 {strides = array<i32>} : memref<28x128xf32, #tpu.memory_space<vmem>>, vector<1x128xf32>,
    %c3 = arith.constant 3 : index
    %c0_11 = arith.constant 0 : index
    %c0_12 = arith.constant 0 : index
    %14 = vector.load %arg1[%c3, %c0_11, %c0_12] : memref<8x32x128xf32, #tpu.memory_space<vmem>>, vector<1x32x128xf32>
    %15 = vector.shape_cast %14 : vector<1x32x128xf32> to vector<32x128xf32>
    %16 = arith.mulf %1, %15 : vector<32x128xf32>
    %cst_13 = arith.constant dense<0.000000e+00> : vector<128xf32>
    %17 = vector.multi_reduction <add>, %16, %cst_13 [0] : vector<32x128xf32> to vector<128xf32>
    %18 = vector.shape_cast %17 : vector<128xf32> to vector<1x128xf32>
    %c2_14 = arith.constant 2 : index
    %c0_15 = arith.constant 0 : index
    %19 = vector.load %arg2[%c2_14, %c0_15] : memref<28x128xf32, #tpu.memory_space<vmem>>, vector<1x128xf32>
    tpu.vector_store %arg2[%c2_14, %c0_15], %18 {strides = array<i32>} : memref<28x128xf32, #tpu.memory_space<vmem>>, vector<1x128xf32>,
    %c4 = arith.constant 4 : index
    %c0_16 = arith.constant 0 : index
    %c0_17 = arith.constant 0 : index
    %20 = vector.load %arg1[%c4, %c0_16, %c0_17] : memref<8x32x128xf32, #tpu.memory_space<vmem>>, vector<1x32x128xf32>
    %21 = vector.shape_cast %20 : vector<1x32x128xf32> to vector<32x128xf32>
    %22 = arith.mulf %1, %21 : vector<32x128xf32>
    %cst_18 = arith.constant dense<0.000000e+00> : vector<128xf32>
    %23 = vector.multi_reduction <add>, %22, %cst_18 [0] : vector<32x128xf32> to vector<128xf32>
    %24 = vector.shape_cast %23 : vector<128xf32> to vector<1x128xf32>
    %c3_19 = arith.constant 3 : index
    %c0_20 = arith.constant 0 : index
    %25 = vector.load %arg2[%c3_19, %c0_20] : memref<28x128xf32, #tpu.memory_space<vmem>>, vector<1x128xf32>
    tpu.vector_store %arg2[%c3_19, %c0_20], %24 {strides = array<i32>} : memref<28x128xf32, #tpu.memory_space<vmem>>, vector<1x128xf32>,
    %c5 = arith.constant 5 : index
    %c0_21 = arith.constant 0 : index
    %c0_22 = arith.constant 0 : index
    %26 = vector.load %arg1[%c5, %c0_21, %c0_22] : memref<8x32x128xf32, #tpu.memory_space<vmem>>, vector<1x32x128xf32>
    %27 = vector.shape_cast %26 : vector<1x32x128xf32> to vector<32x128xf32>
    %28 = arith.mulf %1, %27 : vector<32x128xf32>
    %cst_23 = arith.constant dense<0.000000e+00> : vector<128xf32>
    %29 = vector.multi_reduction <add>, %28, %cst_23 [0] : vector<32x128xf32> to vector<128xf32>
    %30 = vector.shape_cast %29 : vector<128xf32> to vector<1x128xf32>
    %c4_24 = arith.constant 4 : index
    %c0_25 = arith.constant 0 : index
    %31 = vector.load %arg2[%c4_24, %c0_25] : memref<28x128xf32, #tpu.memory_space<vmem>>, vector<1x128xf32>
    tpu.vector_store %arg2[%c4_24, %c0_25], %30 {strides = array<i32>} : memref<28x128xf32, #tpu.memory_space<vmem>>, vector<1x128xf32>,
    %c6 = arith.constant 6 : index
    %c0_26 = arith.constant 0 : index
    %c0_27 = arith.constant 0 : index
    %32 = vector.load %arg1[%c6, %c0_26, %c0_27] : memref<8x32x128xf32, #tpu.memory_space<vmem>>, vector<1x32x128xf32>
    %33 = vector.shape_cast %32 : vector<1x32x128xf32> to vector<32x128xf32>
    %34 = arith.mulf %1, %33 : vector<32x128xf32>
    %cst_28 = arith.constant dense<0.000000e+00> : vector<128xf32>
    %35 = vector.multi_reduction <add>, %34, %cst_28 [0] : vector<32x128xf32> to vector<128xf32>
    %36 = vector.shape_cast %35 : vector<128xf32> to vector<1x128xf32>
    %c5_29 = arith.constant 5 : index
    %c0_30 = arith.constant 0 : index
    %37 = vector.load %arg2[%c5_29, %c0_30] : memref<28x128xf32, #tpu.memory_space<vmem>>, vector<1x128xf32>
    tpu.vector_store %arg2[%c5_29, %c0_30], %36 {strides = array<i32>} : memref<28x128xf32, #tpu.memory_space<vmem>>, vector<1x128xf32>,
    %c7 = arith.constant 7 : index
    %c0_31 = arith.constant 0 : index
    %c0_32 = arith.constant 0 : index
    %38 = vector.load %arg1[%c7, %c0_31, %c0_32] : memref<8x32x128xf32, #tpu.memory_space<vmem>>, vector<1x32x128xf32>
    %39 = vector.shape_cast %38 : vector<1x32x128xf32> to vector<32x128xf32>
    %40 = arith.mulf %1, %39 : vector<32x128xf32>
    %cst_33 = arith.constant dense<0.000000e+00> : vector<128xf32>
    %41 = vector.multi_reduction <add>, %40, %cst_33 [0] : vector<32x128xf32> to vector<128xf32>
    %42 = vector.shape_cast %41 : vector<128xf32> to vector<1x128xf32>
    %c6_34 = arith.constant 6 : index
    %c0_35 = arith.constant 0 : index
    %43 = vector.load %arg2[%c6_34, %c0_35] : memref<28x128xf32, #tpu.memory_space<vmem>>, vector<1x128xf32>
    tpu.vector_store %arg2[%c6_34, %c0_35], %42 {strides = array<i32>} : memref<28x128xf32, #tpu.memory_space<vmem>>, vector<1x128xf32>,
    %c1_36 = arith.constant 1 : index
    %c0_37 = arith.constant 0 : index
    %c0_38 = arith.constant 0 : index
    %44 = vector.load %arg1[%c1_36, %c0_37, %c0_38] : memref<8x32x128xf32, #tpu.memory_space<vmem>>, vector<1x32x128xf32>
    %45 = vector.shape_cast %44 : vector<1x32x128xf32> to vector<32x128xf32>
    %c2_39 = arith.constant 2 : index
    %c0_40 = arith.constant 0 : index
    %c0_41 = arith.constant 0 : index
    %46 = vector.load %arg1[%c2_39, %c0_40, %c0_41] : memref<8x32x128xf32, #tpu.memory_space<vmem>>, vector<1x32x128xf32>
    %47 = vector.shape_cast %46 : vector<1x32x128xf32> to vector<32x128xf32>
    %48 = arith.mulf %45, %47 : vector<32x128xf32>
    %cst_42 = arith.constant dense<0.000000e+00> : vector<128xf32>
    %49 = vector.multi_reduction <add>, %48, %cst_42 [0] : vector<32x128xf32> to vector<128xf32>
    %50 = vector.shape_cast %49 : vector<128xf32> to vector<1x128xf32>
    %c7_43 = arith.constant 7 : index
    %c0_44 = arith.constant 0 : index
    %51 = vector.load %arg2[%c7_43, %c0_44] : memref<28x128xf32, #tpu.memory_space<vmem>>, vector<1x128xf32>
    tpu.vector_store %arg2[%c7_43, %c0_44], %50 {strides = array<i32>} : memref<28x128xf32, #tpu.memory_space<vmem>>, vector<1x128xf32>,
    %c3_45 = arith.constant 3 : index
    %c0_46 = arith.constant 0 : index
    %c0_47 = arith.constant 0 : index
    %52 = vector.load %arg1[%c3_45, %c0_46, %c0_47] : memref<8x32x128xf32, #tpu.memory_space<vmem>>, vector<1x32x128xf32>
    %53 = vector.shape_cast %52 : vector<1x32x128xf32> to vector<32x128xf32>
    %54 = arith.mulf %45, %53 : vector<32x128xf32>
    %cst_48 = arith.constant dense<0.000000e+00> : vector<128xf32>
    %55 = vector.multi_reduction <add>, %54, %cst_48 [0] : vector<32x128xf32> to vector<128xf32>
    %56 = vector.shape_cast %55 : vector<128xf32> to vector<1x128xf32>
    %c8 = arith.constant 8 : index
    %c0_49 = arith.constant 0 : index
    %57 = vector.load %arg2[%c8, %c0_49] : memref<28x128xf32, #tpu.memory_space<vmem>>, vector<1x128xf32>
    tpu.vector_store %arg2[%c8, %c0_49], %56 {strides = array<i32>} : memref<28x128xf32, #tpu.memory_space<vmem>>, vector<1x128xf32>,
    %c4_50 = arith.constant 4 : index
    %c0_51 = arith.constant 0 : index
    %c0_52 = arith.constant 0 : index
    %58 = vector.load %arg1[%c4_50, %c0_51, %c0_52] : memref<8x32x128xf32, #tpu.memory_space<vmem>>, vector<1x32x128xf32>
    %59 = vector.shape_cast %58 : vector<1x32x128xf32> to vector<32x128xf32>
    %60 = arith.mulf %45, %59 : vector<32x128xf32>
    %cst_53 = arith.constant dense<0.000000e+00> : vector<128xf32>
    %61 = vector.multi_reduction <add>, %60, %cst_53 [0] : vector<32x128xf32> to vector<128xf32>
    %62 = vector.shape_cast %61 : vector<128xf32> to vector<1x128xf32>
    %c9 = arith.constant 9 : index
    %c0_54 = arith.constant 0 : index
    %63 = vector.load %arg2[%c9, %c0_54] : memref<28x128xf32, #tpu.memory_space<vmem>>, vector<1x128xf32>
    tpu.vector_store %arg2[%c9, %c0_54], %62 {strides = array<i32>} : memref<28x128xf32, #tpu.memory_space<vmem>>, vector<1x128xf32>,
    %c5_55 = arith.constant 5 : index
    %c0_56 = arith.constant 0 : index
    %c0_57 = arith.constant 0 : index
    %64 = vector.load %arg1[%c5_55, %c0_56, %c0_57] : memref<8x32x128xf32, #tpu.memory_space<vmem>>, vector<1x32x128xf32>
    %65 = vector.shape_cast %64 : vector<1x32x128xf32> to vector<32x128xf32>
    %66 = arith.mulf %45, %65 : vector<32x128xf32>
    %cst_58 = arith.constant dense<0.000000e+00> : vector<128xf32>
    %67 = vector.multi_reduction <add>, %66, %cst_58 [0] : vector<32x128xf32> to vector<128xf32>
    %68 = vector.shape_cast %67 : vector<128xf32> to vector<1x128xf32>
    %c10 = arith.constant 10 : index
    %c0_59 = arith.constant 0 : index
    %69 = vector.load %arg2[%c10, %c0_59] : memref<28x128xf32, #tpu.memory_space<vmem>>, vector<1x128xf32>
    tpu.vector_store %arg2[%c10, %c0_59], %68 {strides = array<i32>} : memref<28x128xf32, #tpu.memory_space<vmem>>, vector<1x128xf32>,
    %c6_60 = arith.constant 6 : index
    %c0_61 = arith.constant 0 : index
    %c0_62 = arith.constant 0 : index
    %70 = vector.load %arg1[%c6_60, %c0_61, %c0_62] : memref<8x32x128xf32, #tpu.memory_space<vmem>>, vector<1x32x128xf32>
    %71 = vector.shape_cast %70 : vector<1x32x128xf32> to vector<32x128xf32>
    %72 = arith.mulf %45, %71 : vector<32x128xf32>
    %cst_63 = arith.constant dense<0.000000e+00> : vector<128xf32>
    %73 = vector.multi_reduction <add>, %72, %cst_63 [0] : vector<32x128xf32> to vector<128xf32>
    %74 = vector.shape_cast %73 : vector<128xf32> to vector<1x128xf32>
    %c11 = arith.constant 11 : index
    %c0_64 = arith.constant 0 : index
    %75 = vector.load %arg2[%c11, %c0_64] : memref<28x128xf32, #tpu.memory_space<vmem>>, vector<1x128xf32>
    tpu.vector_store %arg2[%c11, %c0_64], %74 {strides = array<i32>} : memref<28x128xf32, #tpu.memory_space<vmem>>, vector<1x128xf32>,
    %c7_65 = arith.constant 7 : index
    %c0_66 = arith.constant 0 : index
    %c0_67 = arith.constant 0 : index
    %76 = vector.load %arg1[%c7_65, %c0_66, %c0_67] : memref<8x32x128xf32, #tpu.memory_space<vmem>>, vector<1x32x128xf32>
    %77 = vector.shape_cast %76 : vector<1x32x128xf32> to vector<32x128xf32>
    %78 = arith.mulf %45, %77 : vector<32x128xf32>
    %cst_68 = arith.constant dense<0.000000e+00> : vector<128xf32>
    %79 = vector.multi_reduction <add>, %78, %cst_68 [0] : vector<32x128xf32> to vector<128xf32>
    %80 = vector.shape_cast %79 : vector<128xf32> to vector<1x128xf32>
    %c12 = arith.constant 12 : index
    %c0_69 = arith.constant 0 : index
    %81 = vector.load %arg2[%c12, %c0_69] : memref<28x128xf32, #tpu.memory_space<vmem>>, vector<1x128xf32>
    tpu.vector_store %arg2[%c12, %c0_69], %80 {strides = array<i32>} : memref<28x128xf32, #tpu.memory_space<vmem>>, vector<1x128xf32>,
    %c2_70 = arith.constant 2 : index
    %c0_71 = arith.constant 0 : index
    %c0_72 = arith.constant 0 : index
    %82 = vector.load %arg1[%c2_70, %c0_71, %c0_72] : memref<8x32x128xf32, #tpu.memory_space<vmem>>, vector<1x32x128xf32>
    %83 = vector.shape_cast %82 : vector<1x32x128xf32> to vector<32x128xf32>
    %c3_73 = arith.constant 3 : index
    %c0_74 = arith.constant 0 : index
    %c0_75 = arith.constant 0 : index
    %84 = vector.load %arg1[%c3_73, %c0_74, %c0_75] : memref<8x32x128xf32, #tpu.memory_space<vmem>>, vector<1x32x128xf32>
    %85 = vector.shape_cast %84 : vector<1x32x128xf32> to vector<32x128xf32>
    %86 = arith.mulf %83, %85 : vector<32x128xf32>
    %cst_76 = arith.constant dense<0.000000e+00> : vector<128xf32>
    %87 = vector.multi_reduction <add>, %86, %cst_76 [0] : vector<32x128xf32> to vector<128xf32>
    %88 = vector.shape_cast %87 : vector<128xf32> to vector<1x128xf32>
    %c13 = arith.constant 13 : index
    %c0_77 = arith.constant 0 : index
    %89 = vector.load %arg2[%c13, %c0_77] : memref<28x128xf32, #tpu.memory_space<vmem>>, vector<1x128xf32>
    tpu.vector_store %arg2[%c13, %c0_77], %88 {strides = array<i32>} : memref<28x128xf32, #tpu.memory_space<vmem>>, vector<1x128xf32>,
    %c4_78 = arith.constant 4 : index
    %c0_79 = arith.constant 0 : index
    %c0_80 = arith.constant 0 : index
    %90 = vector.load %arg1[%c4_78, %c0_79, %c0_80] : memref<8x32x128xf32, #tpu.memory_space<vmem>>, vector<1x32x128xf32>
    %91 = vector.shape_cast %90 : vector<1x32x128xf32> to vector<32x128xf32>
    %92 = arith.mulf %83, %91 : vector<32x128xf32>
    %cst_81 = arith.constant dense<0.000000e+00> : vector<128xf32>
    %93 = vector.multi_reduction <add>, %92, %cst_81 [0] : vector<32x128xf32> to vector<128xf32>
    %94 = vector.shape_cast %93 : vector<128xf32> to vector<1x128xf32>
    %c14 = arith.constant 14 : index
    %c0_82 = arith.constant 0 : index
    %95 = vector.load %arg2[%c14, %c0_82] : memref<28x128xf32, #tpu.memory_space<vmem>>, vector<1x128xf32>
    tpu.vector_store %arg2[%c14, %c0_82], %94 {strides = array<i32>} : memref<28x128xf32, #tpu.memory_space<vmem>>, vector<1x128xf32>,
    %c5_83 = arith.constant 5 : index
    %c0_84 = arith.constant 0 : index
    %c0_85 = arith.constant 0 : index
    %96 = vector.load %arg1[%c5_83, %c0_84, %c0_85] : memref<8x32x128xf32, #tpu.memory_space<vmem>>, vector<1x32x128xf32>
    %97 = vector.shape_cast %96 : vector<1x32x128xf32> to vector<32x128xf32>
    %98 = arith.mulf %83, %97 : vector<32x128xf32>
    %cst_86 = arith.constant dense<0.000000e+00> : vector<128xf32>
    %99 = vector.multi_reduction <add>, %98, %cst_86 [0] : vector<32x128xf32> to vector<128xf32>
    %100 = vector.shape_cast %99 : vector<128xf32> to vector<1x128xf32>
    %c15 = arith.constant 15 : index
    %c0_87 = arith.constant 0 : index
    %101 = vector.load %arg2[%c15, %c0_87] : memref<28x128xf32, #tpu.memory_space<vmem>>, vector<1x128xf32>
    tpu.vector_store %arg2[%c15, %c0_87], %100 {strides = array<i32>} : memref<28x128xf32, #tpu.memory_space<vmem>>, vector<1x128xf32>,
    %c6_88 = arith.constant 6 : index
    %c0_89 = arith.constant 0 : index
    %c0_90 = arith.constant 0 : index
    %102 = vector.load %arg1[%c6_88, %c0_89, %c0_90] : memref<8x32x128xf32, #tpu.memory_space<vmem>>, vector<1x32x128xf32>
    %103 = vector.shape_cast %102 : vector<1x32x128xf32> to vector<32x128xf32>
    %104 = arith.mulf %83, %103 : vector<32x128xf32>
    %cst_91 = arith.constant dense<0.000000e+00> : vector<128xf32>
    %105 = vector.multi_reduction <add>, %104, %cst_91 [0] : vector<32x128xf32> to vector<128xf32>
    %106 = vector.shape_cast %105 : vector<128xf32> to vector<1x128xf32>
    %c16 = arith.constant 16 : index
    %c0_92 = arith.constant 0 : index
    %107 = vector.load %arg2[%c16, %c0_92] : memref<28x128xf32, #tpu.memory_space<vmem>>, vector<1x128xf32>
    tpu.vector_store %arg2[%c16, %c0_92], %106 {strides = array<i32>} : memref<28x128xf32, #tpu.memory_space<vmem>>, vector<1x128xf32>,
    %c7_93 = arith.constant 7 : index
    %c0_94 = arith.constant 0 : index
    %c0_95 = arith.constant 0 : index
    %108 = vector.load %arg1[%c7_93, %c0_94, %c0_95] : memref<8x32x128xf32, #tpu.memory_space<vmem>>, vector<1x32x128xf32>
    %109 = vector.shape_cast %108 : vector<1x32x128xf32> to vector<32x128xf32>
    %110 = arith.mulf %83, %109 : vector<32x128xf32>
    %cst_96 = arith.constant dense<0.000000e+00> : vector<128xf32>
    %111 = vector.multi_reduction <add>, %110, %cst_96 [0] : vector<32x128xf32> to vector<128xf32>
    %112 = vector.shape_cast %111 : vector<128xf32> to vector<1x128xf32>
    %c17 = arith.constant 17 : index
    %c0_97 = arith.constant 0 : index
    %113 = vector.load %arg2[%c17, %c0_97] : memref<28x128xf32, #tpu.memory_space<vmem>>, vector<1x128xf32>
    tpu.vector_store %arg2[%c17, %c0_97], %112 {strides = array<i32>} : memref<28x128xf32, #tpu.memory_space<vmem>>, vector<1x128xf32>,
    %c3_98 = arith.constant 3 : index
    %c0_99 = arith.constant 0 : index
    %c0_100 = arith.constant 0 : index
    %114 = vector.load %arg1[%c3_98, %c0_99, %c0_100] : memref<8x32x128xf32, #tpu.memory_space<vmem>>, vector<1x32x128xf32>
    %115 = vector.shape_cast %114 : vector<1x32x128xf32> to vector<32x128xf32>
    %c4_101 = arith.constant 4 : index
    %c0_102 = arith.constant 0 : index
    %c0_103 = arith.constant 0 : index
    %116 = vector.load %arg1[%c4_101, %c0_102, %c0_103] : memref<8x32x128xf32, #tpu.memory_space<vmem>>, vector<1x32x128xf32>
    %117 = vector.shape_cast %116 : vector<1x32x128xf32> to vector<32x128xf32>
    %118 = arith.mulf %115, %117 : vector<32x128xf32>
    %cst_104 = arith.constant dense<0.000000e+00> : vector<128xf32>
    %119 = vector.multi_reduction <add>, %118, %cst_104 [0] : vector<32x128xf32> to vector<128xf32>
    %120 = vector.shape_cast %119 : vector<128xf32> to vector<1x128xf32>
    %c18 = arith.constant 18 : index
    %c0_105 = arith.constant 0 : index
    %121 = vector.load %arg2[%c18, %c0_105] : memref<28x128xf32, #tpu.memory_space<vmem>>, vector<1x128xf32>
    tpu.vector_store %arg2[%c18, %c0_105], %120 {strides = array<i32>} : memref<28x128xf32, #tpu.memory_space<vmem>>, vector<1x128xf32>,
    %c5_106 = arith.constant 5 : index
    %c0_107 = arith.constant 0 : index
    %c0_108 = arith.constant 0 : index
    %122 = vector.load %arg1[%c5_106, %c0_107, %c0_108] : memref<8x32x128xf32, #tpu.memory_space<vmem>>, vector<1x32x128xf32>
    %123 = vector.shape_cast %122 : vector<1x32x128xf32> to vector<32x128xf32>
    %124 = arith.mulf %115, %123 : vector<32x128xf32>
    %cst_109 = arith.constant dense<0.000000e+00> : vector<128xf32>
    %125 = vector.multi_reduction <add>, %124, %cst_109 [0] : vector<32x128xf32> to vector<128xf32>
    %126 = vector.shape_cast %125 : vector<128xf32> to vector<1x128xf32>
    %c19 = arith.constant 19 : index
    %c0_110 = arith.constant 0 : index
    %127 = vector.load %arg2[%c19, %c0_110] : memref<28x128xf32, #tpu.memory_space<vmem>>, vector<1x128xf32>
    tpu.vector_store %arg2[%c19, %c0_110], %126 {strides = array<i32>} : memref<28x128xf32, #tpu.memory_space<vmem>>, vector<1x128xf32>,
    %c6_111 = arith.constant 6 : index
    %c0_112 = arith.constant 0 : index
    %c0_113 = arith.constant 0 : index
    %128 = vector.load %arg1[%c6_111, %c0_112, %c0_113] : memref<8x32x128xf32, #tpu.memory_space<vmem>>, vector<1x32x128xf32>
    %129 = vector.shape_cast %128 : vector<1x32x128xf32> to vector<32x128xf32>
    %130 = arith.mulf %115, %129 : vector<32x128xf32>
    %cst_114 = arith.constant dense<0.000000e+00> : vector<128xf32>
    %131 = vector.multi_reduction <add>, %130, %cst_114 [0] : vector<32x128xf32> to vector<128xf32>
    %132 = vector.shape_cast %131 : vector<128xf32> to vector<1x128xf32>
    %c20 = arith.constant 20 : index
    %c0_115 = arith.constant 0 : index
    %133 = vector.load %arg2[%c20, %c0_115] : memref<28x128xf32, #tpu.memory_space<vmem>>, vector<1x128xf32>
    tpu.vector_store %arg2[%c20, %c0_115], %132 {strides = array<i32>} : memref<28x128xf32, #tpu.memory_space<vmem>>, vector<1x128xf32>,
    %c7_116 = arith.constant 7 : index
    %c0_117 = arith.constant 0 : index
    %c0_118 = arith.constant 0 : index
    %134 = vector.load %arg1[%c7_116, %c0_117, %c0_118] : memref<8x32x128xf32, #tpu.memory_space<vmem>>, vector<1x32x128xf32>
    %135 = vector.shape_cast %134 : vector<1x32x128xf32> to vector<32x128xf32>
    %136 = arith.mulf %115, %135 : vector<32x128xf32>
    %cst_119 = arith.constant dense<0.000000e+00> : vector<128xf32>
    %137 = vector.multi_reduction <add>, %136, %cst_119 [0] : vector<32x128xf32> to vector<128xf32>
    %138 = vector.shape_cast %137 : vector<128xf32> to vector<1x128xf32>
    %c21 = arith.constant 21 : index
    %c0_120 = arith.constant 0 : index
    %139 = vector.load %arg2[%c21, %c0_120] : memref<28x128xf32, #tpu.memory_space<vmem>>, vector<1x128xf32>
    tpu.vector_store %arg2[%c21, %c0_120], %138 {strides = array<i32>} : memref<28x128xf32, #tpu.memory_space<vmem>>, vector<1x128xf32>,
    %c4_121 = arith.constant 4 : index
    %c0_122 = arith.constant 0 : index
    %c0_123 = arith.constant 0 : index
    %140 = vector.load %arg1[%c4_121, %c0_122, %c0_123] : memref<8x32x128xf32, #tpu.memory_space<vmem>>, vector<1x32x128xf32>
    %141 = vector.shape_cast %140 : vector<1x32x128xf32> to vector<32x128xf32>
    %c5_124 = arith.constant 5 : index
    %c0_125 = arith.constant 0 : index
    %c0_126 = arith.constant 0 : index
    %142 = vector.load %arg1[%c5_124, %c0_125, %c0_126] : memref<8x32x128xf32, #tpu.memory_space<vmem>>, vector<1x32x128xf32>
    %143 = vector.shape_cast %142 : vector<1x32x128xf32> to vector<32x128xf32>
    %144 = arith.mulf %141, %143 : vector<32x128xf32>
    %cst_127 = arith.constant dense<0.000000e+00> : vector<128xf32>
    %145 = vector.multi_reduction <add>, %144, %cst_127 [0] : vector<32x128xf32> to vector<128xf32>
    %146 = vector.shape_cast %145 : vector<128xf32> to vector<1x128xf32>
    %c22 = arith.constant 22 : index
    %c0_128 = arith.constant 0 : index
    %147 = vector.load %arg2[%c22, %c0_128] : memref<28x128xf32, #tpu.memory_space<vmem>>, vector<1x128xf32>
    tpu.vector_store %arg2[%c22, %c0_128], %146 {strides = array<i32>} : memref<28x128xf32, #tpu.memory_space<vmem>>, vector<1x128xf32>,
    %c6_129 = arith.constant 6 : index
    %c0_130 = arith.constant 0 : index
    %c0_131 = arith.constant 0 : index
    %148 = vector.load %arg1[%c6_129, %c0_130, %c0_131] : memref<8x32x128xf32, #tpu.memory_space<vmem>>, vector<1x32x128xf32>
    %149 = vector.shape_cast %148 : vector<1x32x128xf32> to vector<32x128xf32>
    %150 = arith.mulf %141, %149 : vector<32x128xf32>
    %cst_132 = arith.constant dense<0.000000e+00> : vector<128xf32>
    %151 = vector.multi_reduction <add>, %150, %cst_132 [0] : vector<32x128xf32> to vector<128xf32>
    %152 = vector.shape_cast %151 : vector<128xf32> to vector<1x128xf32>
    %c23 = arith.constant 23 : index
    %c0_133 = arith.constant 0 : index
    %153 = vector.load %arg2[%c23, %c0_133] : memref<28x128xf32, #tpu.memory_space<vmem>>, vector<1x128xf32>
    tpu.vector_store %arg2[%c23, %c0_133], %152 {strides = array<i32>} : memref<28x128xf32, #tpu.memory_space<vmem>>, vector<1x128xf32>,
    %c7_134 = arith.constant 7 : index
    %c0_135 = arith.constant 0 : index
    %c0_136 = arith.constant 0 : index
    %154 = vector.load %arg1[%c7_134, %c0_135, %c0_136] : memref<8x32x128xf32, #tpu.memory_space<vmem>>, vector<1x32x128xf32>
    %155 = vector.shape_cast %154 : vector<1x32x128xf32> to vector<32x128xf32>
    %156 = arith.mulf %141, %155 : vector<32x128xf32>
    %cst_137 = arith.constant dense<0.000000e+00> : vector<128xf32>
    %157 = vector.multi_reduction <add>, %156, %cst_137 [0] : vector<32x128xf32> to vector<128xf32>
    %158 = vector.shape_cast %157 : vector<128xf32> to vector<1x128xf32>
    %c24 = arith.constant 24 : index
    %c0_138 = arith.constant 0 : index
    %159 = vector.load %arg2[%c24, %c0_138] : memref<28x128xf32, #tpu.memory_space<vmem>>, vector<1x128xf32>
    tpu.vector_store %arg2[%c24, %c0_138], %158 {strides = array<i32>} : memref<28x128xf32, #tpu.memory_space<vmem>>, vector<1x128xf32>,
    %c5_139 = arith.constant 5 : index
    %c0_140 = arith.constant 0 : index
    %c0_141 = arith.constant 0 : index
    %160 = vector.load %arg1[%c5_139, %c0_140, %c0_141] : memref<8x32x128xf32, #tpu.memory_space<vmem>>, vector<1x32x128xf32>
    %161 = vector.shape_cast %160 : vector<1x32x128xf32> to vector<32x128xf32>
    %c6_142 = arith.constant 6 : index
    %c0_143 = arith.constant 0 : index
    %c0_144 = arith.constant 0 : index
    %162 = vector.load %arg1[%c6_142, %c0_143, %c0_144] : memref<8x32x128xf32, #tpu.memory_space<vmem>>, vector<1x32x128xf32>
    %163 = vector.shape_cast %162 : vector<1x32x128xf32> to vector<32x128xf32>
    %164 = arith.mulf %161, %163 : vector<32x128xf32>
    %cst_145 = arith.constant dense<0.000000e+00> : vector<128xf32>
    %165 = vector.multi_reduction <add>, %164, %cst_145 [0] : vector<32x128xf32> to vector<128xf32>
    %166 = vector.shape_cast %165 : vector<128xf32> to vector<1x128xf32>
    %c25 = arith.constant 25 : index
    %c0_146 = arith.constant 0 : index
    %167 = vector.load %arg2[%c25, %c0_146] : memref<28x128xf32, #tpu.memory_space<vmem>>, vector<1x128xf32>
    tpu.vector_store %arg2[%c25, %c0_146], %166 {strides = array<i32>} : memref<28x128xf32, #tpu.memory_space<vmem>>, vector<1x128xf32>,
    %c7_147 = arith.constant 7 : index
    %c0_148 = arith.constant 0 : index
    %c0_149 = arith.constant 0 : index
    %168 = vector.load %arg1[%c7_147, %c0_148, %c0_149] : memref<8x32x128xf32, #tpu.memory_space<vmem>>, vector<1x32x128xf32>
    %169 = vector.shape_cast %168 : vector<1x32x128xf32> to vector<32x128xf32>
    %170 = arith.mulf %161, %169 : vector<32x128xf32>
    %cst_150 = arith.constant dense<0.000000e+00> : vector<128xf32>
    %171 = vector.multi_reduction <add>, %170, %cst_150 [0] : vector<32x128xf32> to vector<128xf32>
    %172 = vector.shape_cast %171 : vector<128xf32> to vector<1x128xf32>
    %c26 = arith.constant 26 : index
    %c0_151 = arith.constant 0 : index
    %173 = vector.load %arg2[%c26, %c0_151] : memref<28x128xf32, #tpu.memory_space<vmem>>, vector<1x128xf32>
    tpu.vector_store %arg2[%c26, %c0_151], %172 {strides = array<i32>} : memref<28x128xf32, #tpu.memory_space<vmem>>, vector<1x128xf32>,
    %c6_152 = arith.constant 6 : index
    %c0_153 = arith.constant 0 : index
    %c0_154 = arith.constant 0 : index
    %174 = vector.load %arg1[%c6_152, %c0_153, %c0_154] : memref<8x32x128xf32, #tpu.memory_space<vmem>>, vector<1x32x128xf32>
    %175 = vector.shape_cast %174 : vector<1x32x128xf32> to vector<32x128xf32>
    %c7_155 = arith.constant 7 : index
    %c0_156 = arith.constant 0 : index
    %c0_157 = arith.constant 0 : index
    %176 = vector.load %arg1[%c7_155, %c0_156, %c0_157] : memref<8x32x128xf32, #tpu.memory_space<vmem>>, vector<1x32x128xf32>
    %177 = vector.shape_cast %176 : vector<1x32x128xf32> to vector<32x128xf32>
    %178 = arith.mulf %175, %177 : vector<32x128xf32>
    %cst_158 = arith.constant dense<0.000000e+00> : vector<128xf32>
    %179 = vector.multi_reduction <add>, %178, %cst_158 [0] : vector<32x128xf32> to vector<128xf32>
    %180 = vector.shape_cast %179 : vector<128xf32> to vector<1x128xf32>
    %c27 = arith.constant 27 : index
    %c0_159 = arith.constant 0 : index
    %181 = vector.load %arg2[%c27, %c0_159] : memref<28x128xf32, #tpu.memory_space<vmem>>, vector<1x128xf32>
    tpu.vector_store %arg2[%c27, %c0_159], %180 {strides = array<i32>} : memref<28x128xf32, #tpu.memory_space<vmem>>, vector<1x128xf32>,
    return
  }
  func.func @transform_0(%arg0: i32) -> (i32, i32, i32) {
    %c0_i32 = arith.constant 0 : i32
    %c0_i32_0 = arith.constant 0 : i32
    %c0_i32_1 = arith.constant 0 : i32
    return %c0_i32, %c0_i32_0, %arg0 : i32, i32, i32
  }
  func.func @transform_1(%arg0: i32) -> (i32, i32) {
    %c0_i32 = arith.constant 0 : i32
    %c0_i32_0 = arith.constant 0 : i32
    return %c0_i32, %arg0 : i32, i32
  }
}

</mosaic_0001>

<bundles_post_ra>
// kernel: tpu_custom_call.1
= control target key start
LH: loop header
LB: loop body
LE: loop exit
PB: predicated region body
PF: predicated region fallthrough
CT: control target
= control target key end

     0   :  { %6 = vsyncpa [#allocation3], 0  ;;  %s969_s0 = inlined_call_operand.hbm [shape: f32[8,32,128], index: 0, kind: input, shape index: {}]   ;;  %s970_s1 = inlined_call_operand.hbm [shape: f32[28,128], index: 1, kind: output, shape index: {}]  }
   0x1   :  { %7 = vsyncpa [#allocation4], 0  ;;  %s631_s6 = smov [#allocation2]   ;;  %s583_s10 = scalar_lea.hbm %s969_s0, 4096 }
   0x2   :  { %s13_s7 = sshll.u32 %s631_s6, 4  ;;  %p584_p0 = scmp.ne.s32.totalorder %s969_s0, %s583_s10  ;;  %s14_s7 = int_to_ptr.vmem [resolvable:$true] %s13_s7 }
   0x3   :  { %p587_p1 = scmp.lt.u32.totalorder %s583_s10, %s969_s0 }
   0x5   :  { %p589_p2 = pnand %p587_p1, %p584_p0 }
   0x7   :  { %592 = shalt.err (!%p589_p2)
}
   0x8   :  { %s593_s15 = scalar_lea.vmem %s14_s7, 4096  ;;  %p598_p4 = scmp.lt.s32.totalorder %s14_s7, %s14_s7 }
   0x9   :  { %p594_p3 = scmp.ne.s32.totalorder %s14_s7, %s593_s15  ;;  %p599_p5 = scmp.lt.s32.totalorder %s593_s15, %s593_s15 }
   0xb   :  { %p600_p6 = por %p599_p5, %p598_p4 }
   0xd   :  { %p601_p7 = pnand %p600_p6, %p594_p3 }
   0xf   :  { %604 = shalt.err (!%p601_p7)
}
  0x10   :  { %s632_s16 = smov 128   ;;  %s633_s17 = smov 8  }
  0x11   :  { %19 = dma.hbm_to_vmem [thread:$0]  %s969_s0, 4096, %s14_s7, [#allocation3], %s632_s16, %s632_s16, %s633_s17  }
  0x12   :  { %627 = dma.done.wait [#allocation3], 4096  }
  0x13   :  { %628 = vsyncadd [#allocation3], 4294963200  ;;  %v660_v0 = vld [vmem:[#allocation2] sm:$0xff]  ;;  %v662_v1 = vld [vmem:[#allocation2 + $0x8] sm:$0xff]  ;;  %s634_s0 = smov [#allocation5]  }
  0x14   :  { %v664_v2 = vld [vmem:[#allocation2 + $0x10] sm:$0xff]  ;;  %v666_v3 = vld [vmem:[#allocation2 + $0x18] sm:$0xff]  ;;  %v668_v4 = vld [vmem:[#allocation2 + $0x20] sm:$0xff]  ;;  %s567_s20 = sshll.u32 %s634_s0, 4  ;;  %s568_s20 = int_to_ptr.vmem [resolvable:$true] %s567_s20 }
  0x15   :  { %v670_v5 = vld [vmem:[#allocation2 + $0x28] sm:$0xff]  ;;  %v672_v6 = vld [vmem:[#allocation2 + $0x30] sm:$0xff]  ;;  %v674_v7 = vld [vmem:[#allocation2 + $0x38] sm:$0xff]  ;;  %v32_v8 = vmul.f32 %v668_v4, %v660_v0  ;;  %s605_s21 = scalar_lea.vmem %s568_s20, 512  ;;  %p610_p9 = scmp.lt.s32.totalorder %s568_s20, %s568_s20 }
  0x16   :  { %v33_v9 = vmul.f32 %v670_v5, %v662_v1  ;;  %v680_v10 = vld [vmem:[#allocation2 + $0x40] sm:$0xff]  ;;  %v34_v11 = vmul.f32 %v672_v6, %v664_v2  ;;  %v35_v12 = vmul.f32 %v674_v7, %v666_v3  ;;  %v686_v13 = vld [vmem:[#allocation2 + $0x48] sm:$0xff]  ;;  %v688_v14 = vld [vmem:[#allocation2 + $0x50] sm:$0xff]  ;;  %p606_p8 = scmp.ne.s32.totalorder %s568_s20, %s605_s21  ;;  %p611_p10 = scmp.lt.s32.totalorder %s605_s21, %s605_s21 }
  0x17   :  { %v690_v15 = vld [vmem:[#allocation2 + $0x58] sm:$0xff]  ;;  %v51_v16 = vmul.f32 %v680_v10, %v660_v0  ;;  %v696_v17 = vmul.f32 %v680_v10, %v668_v4  ;;  %v52_v19 = vmul.f32 %v686_v13, %v662_v1  ;;  %v53_v20 = vmul.f32 %v688_v14, %v664_v2  ;;  %v704_v22 = vld [vmem:[#allocation2 + $0x60] sm:$0xff]  ;;  %v706_v23 = vld [vmem:[#allocation2 + $0x68] sm:$0xff] }
  0x18   :  { %v36_v18 = vadd.f32 %v33_v9, %v32_v8  ;;  %v54_v21 = vmul.f32 %v690_v15, %v666_v3  ;;  %v708_v24 = vld [vmem:[#allocation2 + $0x70] sm:$0xff]  ;;  %v710_v25 = vld [vmem:[#allocation2 + $0x78] sm:$0xff]  ;;  %v70_v26 = vmul.f32 %v704_v22, %v660_v0  ;;  %v71_v27 = vmul.f32 %v706_v23, %v662_v1  ;;  %v718_v29 = vld [vmem:[#allocation2 + $0x80] sm:$0xff]  ;;  %p612_p11 = por %p611_p10, %p610_p9 }
  0x19   :  { %v72_v28 = vmul.f32 %v708_v24, %v664_v2  ;;  %v720_v30 = vld [vmem:[#allocation2 + $0x88] sm:$0xff]  ;;  %v724_v31 = vmul.f32 %v686_v13, %v670_v5  ;;  %v55_v33 = vadd.f32 %v52_v19, %v51_v16  ;;  %v73_v34 = vmul.f32 %v710_v25, %v666_v3  ;;  %v728_v35 = vld [vmem:[#allocation2 + $0x90] sm:$0xff]  ;;  %v730_v36 = vld [vmem:[#allocation2 + $0x98] sm:$0xff] }
  0x1a   :  { %v37_v32 = vadd.f32 %v36_v18, %v34_v11  ;;  %v89_v37 = vmul.f32 %v718_v29, %v660_v0  ;;  %v734_v38 = vld [vmem:[#allocation2 + $0xa0] sm:$0xff]  ;;  %v74_v39 = vadd.f32 %v71_v27, %v70_v26  ;;  %v90_v40 = vmul.f32 %v720_v30, %v662_v1  ;;  %v742_v43 = vld [vmem:[#allocation2 + $0xa8] sm:$0xff]  ;;  %v744_v44 = vld [vmem:[#allocation2 + $0xb0] sm:$0xff]  ;;  %p613_p12 = pnand %p612_p11, %p606_p8 }
  0x1b   :  { %v91_v41 = vmul.f32 %v728_v35, %v664_v2  ;;  %v92_v42 = vmul.f32 %v730_v36, %v666_v3  ;;  %v746_v45 = vld [vmem:[#allocation2 + $0xb8] sm:$0xff]  ;;  %v56_v47 = vadd.f32 %v55_v33, %v53_v20  ;;  %v108_v48 = vmul.f32 %v734_v38, %v660_v0  ;;  %v752_v50 = vld [vmem:[#allocation2 + $0xc0] sm:$0xff]  ;;  %v754_v51 = vld [vmem:[#allocation2 + $0xc8] sm:$0xff] }
  0x1c   :  { %v38_v46 = vadd.f32 %v37_v32, %v35_v12  ;;  %v109_v49 = vmul.f32 %v742_v43, %v662_v1  ;;  %v756_v52 = vld [vmem:[#allocation2 + $0xd0] sm:$0xff]  ;;  %v75_v53 = vadd.f32 %v74_v39, %v72_v28  ;;  %v93_v54 = vadd.f32 %v90_v40, %v89_v37  ;;  %v762_v57 = vld [vmem:[#allocation2 + $0xd8] sm:$0xff]  ;;  %v766_v62 = vld [vmem:[#allocation2 + $0xe0] sm:$0xff] }
  0x1d   :  { %v110_v55 = vmul.f32 %v744_v44, %v664_v2  ;;  %v111_v56 = vmul.f32 %v746_v45, %v666_v3  ;;  %v57_v59 = vadd.f32 %v56_v47, %v54_v21  ;;  %v127_v61 = vmul.f32 %v752_v50, %v660_v0  ;;  %v772_v12 = vld [vmem:[#allocation2 + $0xe8] sm:$0xff]  ;;  %v776_v21 = vld [vmem:[#allocation2 + $0xf0] sm:$0xff]  ;;  %v778_v32 = vld [vmem:[#allocation2 + $0xf8] sm:$0xff] }
  0x1e   :  { %v39_v58 = vrot.slane %v38_v46, 4  ;;  %v112_v60 = vadd.f32 %v109_v49, %v108_v48  ;;  %v76_v63 = vadd.f32 %v75_v53, %v73_v34  ;;  %v94_v8 = vadd.f32 %v93_v54, %v91_v41 }
  0x1f   :  { %v128_v9 = vmul.f32 %v754_v51, %v662_v1  ;;  %v129_v11 = vmul.f32 %v756_v52, %v664_v2  ;;  %v58_v18 = vrot.slane %v57_v59, 4  ;;  %v130_v20 = vmul.f32 %v762_v57, %v666_v3 }
  0x20   :  { %v40_v16 = vadd.f32 %v39_v58, %v38_v46  ;;  %v113_v19 = vadd.f32 %v112_v60, %v110_v55  ;;  %v77_v26 = vrot.slane %v76_v63, 4  ;;  %v95_v27 = vadd.f32 %v94_v8, %v92_v42 }
  0x21   :  { %v131_v28 = vadd.f32 %v128_v9, %v127_v61  ;;  %v146_v33 = vmul.f32 %v766_v62, %v660_v0  ;;  %v59_v37 = vadd.f32 %v58_v18, %v57_v59  ;;  %v147_v40 = vmul.f32 %v772_v12, %v662_v1 }
  0x22   :  { %v41_v34 = vrot.slane %v40_v16, 2  ;;  %v114_v39 = vadd.f32 %v113_v19, %v111_v56  ;;  %v78_v41 = vadd.f32 %v77_v26, %v76_v63  ;;  %v96_v46 = vrot.slane %v95_v27, 4 }
  0x23   :  { %v132_v47 = vadd.f32 %v131_v28, %v129_v11  ;;  %v148_v48 = vmul.f32 %v776_v21, %v664_v2  ;;  %v60_v42 = vrot.slane %v59_v37, 2  ;;  %v149_v54 = vmul.f32 %v778_v32, %v666_v3 }
  0x24   :  { %v42_v49 = vadd.f32 %v41_v34, %v40_v16  ;;  %v115_v53 = vrot.slane %v114_v39, 4  ;;  %v79_v55 = vrot.slane %v78_v41, 2  ;;  %v97_v0 = vadd.f32 %v96_v46, %v95_v27 }
  0x25   :  { %v133_v58 = vadd.f32 %v132_v47, %v130_v20  ;;  %v150_v59 = vadd.f32 %v147_v40, %v146_v33  ;;  %v61_v60 = vadd.f32 %v60_v42, %v59_v37  ;;  %v170_v1 = vmul.f32 %v688_v14, %v672_v6 }
  0x26   :  { %v43_v56 = vrot.slane %v42_v49, 1  ;;  %v116_v61 = vadd.f32 %v115_v53, %v114_v39  ;;  %v80_v63 = vadd.f32 %v79_v55, %v78_v41  ;;  %v98_v8 = vrot.slane %v97_v0, 2 }
  0x27   :  { %v134_v9 = vrot.slane %v133_v58, 4  ;;  %v151_v2 = vadd.f32 %v150_v59, %v148_v48  ;;  %v62_v16 = vrot.slane %v61_v60, 1  ;;  %v171_v3 = vmul.f32 %v690_v15, %v674_v7 }
  0x28   :  { %v44_v11 = vadd.f32 %v43_v56, %v42_v49  ;;  %v117_v18 = vrot.slane %v116_v61, 2  ;;  %v81_v19 = vrot.slane %v80_v63, 1  ;;  %v99_v26 = vadd.f32 %v98_v8, %v97_v0 }
  0x29   :  { %v135_v20 = vadd.f32 %v134_v9, %v133_v58  ;;  %v152_v27 = vadd.f32 %v151_v2, %v149_v54  ;;  %v63_v28 = vadd.f32 %v62_v16, %v61_v60  ;;  %v172_v34 = vadd.f32 %v724_v31, %v696_v17 }
  0x2a   :  { %45 = vst [vmem:[#allocation5] sm:$0x1] %v44_v11  ;;  %v118_v33 = vadd.f32 %v117_v18, %v116_v61  ;;  %v186_v37 = vmul.f32 %v704_v22, %v668_v4  ;;  %v82_v39 = vadd.f32 %v81_v19, %v80_v63  ;;  %v100_v40 = vrot.slane %v99_v26, 1 }
  0x2b   :  { %v136_v41 = vrot.slane %v135_v20, 2  ;;  %v153_v46 = vrot.slane %v152_v27, 4  ;;  %64 = vst [vmem:[#allocation5 + $0x1] sm:$0x1] %v63_v28  ;;  %v173_v48 = vadd.f32 %v172_v34, %v170_v1  ;;  %v187_v49 = vmul.f32 %v706_v23, %v670_v5 }
  0x2c   :  { %v119_v47 = vrot.slane %v118_v33, 1  ;;  %v188_v42 = vmul.f32 %v708_v24, %v672_v6  ;;  %83 = vst [vmem:[#allocation5 + $0x2] sm:$0x1] %v82_v39  ;;  %v101_v53 = vadd.f32 %v100_v40, %v99_v26  ;;  %v189_v31 = vmul.f32 %v710_v25, %v674_v7 }
  0x2d   :  { %v137_v54 = vadd.f32 %v136_v41, %v135_v20  ;;  %v154_v17 = vadd.f32 %v153_v46, %v152_v27  ;;  %v174_v0 = vadd.f32 %v173_v48, %v171_v3  ;;  %v190_v58 = vadd.f32 %v187_v49, %v186_v37 }
  0x2e   :  { %v120_v55 = vadd.f32 %v119_v47, %v118_v33  ;;  %v204_v59 = vmul.f32 %v718_v29, %v668_v4  ;;  %102 = vst [vmem:[#allocation5 + $0x3] sm:$0x1] %v101_v53  ;;  %v205_v61 = vmul.f32 %v720_v30, %v670_v5  ;;  %v206_v1 = vmul.f32 %v728_v35, %v672_v6 }
  0x2f   :  { %v138_v56 = vrot.slane %v137_v54, 1  ;;  %v155_v60 = vrot.slane %v154_v17, 2  ;;  %v175_v63 = vrot.slane %v174_v0, 4  ;;  %v191_v8 = vadd.f32 %v190_v58, %v188_v42 }
  0x30   :  { %121 = vst [vmem:[#allocation5 + $0x4] sm:$0x1] %v120_v55  ;;  %v207_v9 = vmul.f32 %v730_v36, %v674_v7  ;;  %v222_v2 = vmul.f32 %v734_v38, %v668_v4  ;;  %v208_v18 = vadd.f32 %v205_v61, %v204_v59  ;;  %v223_v3 = vmul.f32 %v742_v43, %v670_v5 }
  0x31   :  { %v139_v11 = vadd.f32 %v138_v56, %v137_v54  ;;  %v156_v16 = vadd.f32 %v155_v60, %v154_v17  ;;  %v176_v19 = vadd.f32 %v175_v63, %v174_v0  ;;  %v192_v26 = vadd.f32 %v191_v8, %v189_v31 }
  0x32   :  { %v224_v20 = vmul.f32 %v744_v44, %v672_v6  ;;  %v225_v27 = vmul.f32 %v746_v45, %v674_v7  ;;  %v209_v33 = vadd.f32 %v208_v18, %v206_v1  ;;  %v226_v34 = vadd.f32 %v223_v3, %v222_v2 }
  0x33   :  { %140 = vst [vmem:[#allocation5 + $0x5] sm:$0x1] %v139_v11  ;;  %v157_v28 = vrot.slane %v156_v16, 1  ;;  %v240_v37 = vmul.f32 %v752_v50, %v668_v4  ;;  %v177_v39 = vrot.slane %v176_v19, 2  ;;  %v193_v40 = vrot.slane %v192_v26, 4 }
  0x34   :  { %v241_v41 = vmul.f32 %v754_v51, %v670_v5  ;;  %v242_v46 = vmul.f32 %v756_v52, %v672_v6  ;;  %v210_v48 = vadd.f32 %v209_v33, %v207_v9  ;;  %v227_v49 = vadd.f32 %v226_v34, %v224_v20 }
  0x35   :  { %v158_v47 = vadd.f32 %v157_v28, %v156_v16  ;;  %v243_v42 = vmul.f32 %v762_v57, %v674_v7  ;;  %v178_v53 = vadd.f32 %v177_v39, %v176_v19  ;;  %v194_v54 = vadd.f32 %v193_v40, %v192_v26 }
  0x36   :  { %v244_v17 = vadd.f32 %v241_v41, %v240_v37  ;;  %v258_v31 = vmul.f32 %v766_v62, %v668_v4  ;;  %v211_v55 = vrot.slane %v210_v48, 4  ;;  %v228_v0 = vadd.f32 %v227_v49, %v225_v27 }
  0x37   :  { %159 = vst [vmem:[#allocation5 + $0x6] sm:$0x1] %v158_v47  ;;  %v259_v58 = vmul.f32 %v772_v12, %v670_v5  ;;  %v260_v59 = vmul.f32 %v776_v21, %v672_v6  ;;  %v179_v56 = vrot.slane %v178_v53, 1  ;;  %v195_v60 = vrot.slane %v194_v54, 2 }
  0x38   :  { %v245_v61 = vadd.f32 %v244_v17, %v242_v46  ;;  %v261_v1 = vmul.f32 %v778_v32, %v674_v7  ;;  %v212_v63 = vadd.f32 %v211_v55, %v210_v48  ;;  %v229_v8 = vrot.slane %v228_v0, 4 }
  0x39   :  { %v262_v9 = vadd.f32 %v259_v58, %v258_v31  ;;  %v280_v4 = vmul.f32 %v704_v22, %v680_v10  ;;  %v180_v2 = vadd.f32 %v179_v56, %v178_v53  ;;  %v196_v11 = vadd.f32 %v195_v60, %v194_v54 }
  0x3a   :  { %v246_v16 = vadd.f32 %v245_v61, %v243_v42  ;;  %v281_v5 = vmul.f32 %v706_v23, %v686_v13  ;;  %v213_v18 = vrot.slane %v212_v63, 2  ;;  %v230_v6 = vadd.f32 %v229_v8, %v228_v0 }
  0x3b   :  { %v263_v3 = vadd.f32 %v262_v9, %v260_v59  ;;  %v282_v19 = vmul.f32 %v708_v24, %v688_v14  ;;  %181 = vst [vmem:[#allocation5 + $0x7] sm:$0x1] %v180_v2  ;;  %v197_v7 = vrot.slane %v196_v11, 1  ;;  %v283_v20 = vmul.f32 %v710_v25, %v690_v15 }
  0x3c   :  { %v247_v26 = vrot.slane %v246_v16, 4  ;;  %v284_v27 = vadd.f32 %v281_v5, %v280_v4  ;;  %v214_v28 = vadd.f32 %v213_v18, %v212_v63  ;;  %v231_v33 = vrot.slane %v230_v6, 2 }
  0x3d   :  { %v264_v34 = vadd.f32 %v263_v3, %v261_v1  ;;  %v298_v37 = vmul.f32 %v718_v29, %v680_v10  ;;  %v198_v39 = vadd.f32 %v197_v7, %v196_v11  ;;  %v299_v46 = vmul.f32 %v720_v30, %v686_v13 }
  0x3e   :  { %v248_v40 = vadd.f32 %v247_v26, %v246_v16  ;;  %v285_v41 = vadd.f32 %v284_v27, %v282_v19  ;;  %v215_v47 = vrot.slane %v214_v28, 1  ;;  %v232_v48 = vadd.f32 %v231_v33, %v230_v6 }
  0x3f   :  { %v265_v49 = vrot.slane %v264_v34, 4  ;;  %v300_v42 = vmul.f32 %v728_v35, %v688_v14  ;;  %199 = vst [vmem:[#allocation5 + $0x8] sm:$0x1] %v198_v39  ;;  %v301_v17 = vmul.f32 %v730_v36, %v690_v15  ;;  %v302_v31 = vadd.f32 %v299_v46, %v298_v37 }
  0x40   :  { %v249_v53 = vrot.slane %v248_v40, 2  ;;  %v286_v54 = vadd.f32 %v285_v41, %v283_v20  ;;  %v216_v55 = vadd.f32 %v215_v47, %v214_v28  ;;  %v233_v0 = vrot.slane %v232_v48, 1 }
  0x41   :  { %v266_v58 = vadd.f32 %v265_v49, %v264_v34  ;;  %v316_v59 = vmul.f32 %v734_v38, %v680_v10  ;;  %v303_v61 = vadd.f32 %v302_v31, %v300_v42  ;;  %v317_v1 = vmul.f32 %v742_v43, %v686_v13 }
  0x42   :  { %v250_v56 = vadd.f32 %v249_v53, %v248_v40  ;;  %v287_v60 = vrot.slane %v286_v54, 4  ;;  %217 = vst [vmem:[#allocation5 + $0x9] sm:$0x1] %v216_v55  ;;  %v234_v63 = vadd.f32 %v233_v0, %v232_v48  ;;  %v318_v9 = vmul.f32 %v744_v44, %v688_v14 }
  0x43   :  { %v267_v8 = vrot.slane %v266_v58, 2  ;;  %v319_v4 = vmul.f32 %v746_v45, %v690_v15  ;;  %v304_v16 = vadd.f32 %v303_v61, %v301_v17  ;;  %v320_v5 = vadd.f32 %v317_v1, %v316_v59 }
  0x44   :  { %v251_v2 = vrot.slane %v250_v56, 1  ;;  %v288_v11 = vadd.f32 %v287_v60, %v286_v54  ;;  %235 = vst [vmem:[#allocation5 + $0xa] sm:$0x1] %v234_v63  ;;  %v334_v6 = vmul.f32 %v752_v50, %v680_v10  ;;  %v335_v3 = vmul.f32 %v754_v51, %v686_v13 }
  0x45   :  { %v268_v18 = vadd.f32 %v267_v8, %v266_v58  ;;  %v336_v19 = vmul.f32 %v756_v52, %v688_v14  ;;  %v305_v20 = vrot.slane %v304_v16, 4  ;;  %v321_v27 = vadd.f32 %v320_v5, %v318_v9 }
  0x46   :  { %v252_v7 = vadd.f32 %v251_v2, %v250_v56  ;;  %v289_v26 = vrot.slane %v288_v11, 2  ;;  %v337_v33 = vmul.f32 %v762_v57, %v690_v15  ;;  %v338_v34 = vadd.f32 %v335_v3, %v334_v6 }
  0x47   :  { %v269_v28 = vrot.slane %v268_v18, 1  ;;  %v352_v37 = vmul.f32 %v766_v62, %v680_v10  ;;  %v306_v40 = vadd.f32 %v305_v20, %v304_v16  ;;  %v322_v41 = vadd.f32 %v321_v27, %v319_v4 }
  0x48   :  { %253 = vst [vmem:[#allocation5 + $0xb] sm:$0x1] %v252_v7  ;;  %v290_v39 = vadd.f32 %v289_v26, %v288_v11  ;;  %v353_v46 = vmul.f32 %v772_v12, %v686_v13  ;;  %v339_v48 = vadd.f32 %v338_v34, %v336_v19  ;;  %v354_v49 = vmul.f32 %v776_v21, %v688_v14 }
  0x49   :  { %v270_v47 = vadd.f32 %v269_v28, %v268_v18  ;;  %v355_v42 = vmul.f32 %v778_v32, %v690_v15  ;;  %v307_v54 = vrot.slane %v306_v40, 2  ;;  %v323_v17 = vrot.slane %v322_v41, 4 }
  0x4a   :  { %v291_v53 = vrot.slane %v290_v39, 1  ;;  %v356_v31 = vadd.f32 %v353_v46, %v352_v37  ;;  %v340_v10 = vadd.f32 %v339_v48, %v337_v33  ;;  %v374_v55 = vmul.f32 %v718_v29, %v704_v22 }
  0x4b   :  { %271 = vst [vmem:[#allocation5 + $0xc] sm:$0x1] %v270_v47  ;;  %v375_v13 = vmul.f32 %v720_v30, %v706_v23  ;;  %v376_v0 = vmul.f32 %v728_v35, %v708_v24  ;;  %v308_v14 = vadd.f32 %v307_v54, %v306_v40  ;;  %v324_v59 = vadd.f32 %v323_v17, %v322_v41 }
  0x4c   :  { %v292_v58 = vadd.f32 %v291_v53, %v290_v39  ;;  %v357_v56 = vadd.f32 %v356_v31, %v354_v49  ;;  %v341_v15 = vrot.slane %v340_v10, 4  ;;  %v377_v60 = vmul.f32 %v730_v36, %v710_v25 }
  0x4d   :  { %v378_v61 = vadd.f32 %v375_v13, %v374_v55  ;;  %v392_v1 = vmul.f32 %v734_v38, %v704_v22  ;;  %v309_v63 = vrot.slane %v308_v14, 1  ;;  %v325_v8 = vrot.slane %v324_v59, 2 }
  0x4e   :  { %293 = vst [vmem:[#allocation5 + $0xd] sm:$0x1] %v292_v58  ;;  %v358_v9 = vadd.f32 %v357_v56, %v355_v42  ;;  %v393_v4 = vmul.f32 %v742_v43, %v706_v23  ;;  %v342_v2 = vadd.f32 %v341_v15, %v340_v10  ;;  %v394_v16 = vmul.f32 %v744_v44, %v708_v24 }
  0x4f   :  { %v379_v11 = vadd.f32 %v378_v61, %v376_v0  ;;  %v395_v5 = vmul.f32 %v746_v45, %v710_v25  ;;  %v310_v18 = vadd.f32 %v309_v63, %v308_v14  ;;  %v326_v6 = vadd.f32 %v325_v8, %v324_v59 }
  0x50   :  { %v359_v3 = vrot.slane %v358_v9, 4  ;;  %v396_v19 = vadd.f32 %v393_v4, %v392_v1  ;;  %v343_v7 = vrot.slane %v342_v2, 2  ;;  %v410_v20 = vmul.f32 %v752_v50, %v704_v22 }
  0x51   :  { %v380_v26 = vadd.f32 %v379_v11, %v377_v60  ;;  %v411_v27 = vmul.f32 %v754_v51, %v706_v23  ;;  %311 = vst [vmem:[#allocation5 + $0xe] sm:$0x1] %v310_v18  ;;  %v327_v28 = vrot.slane %v326_v6, 1  ;;  %v412_v37 = vmul.f32 %v756_v52, %v708_v24 }
  0x52   :  { %v360_v33 = vadd.f32 %v359_v3, %v358_v9  ;;  %v397_v34 = vadd.f32 %v396_v19, %v394_v16  ;;  %v344_v39 = vadd.f32 %v343_v7, %v342_v2  ;;  %v413_v41 = vmul.f32 %v762_v57, %v710_v25 }
  0x53   :  { %v381_v40 = vrot.slane %v380_v26, 4  ;;  %v414_v46 = vadd.f32 %v411_v27, %v410_v20  ;;  %v328_v47 = vadd.f32 %v327_v28, %v326_v6  ;;  %v428_v42 = vmul.f32 %v766_v62, %v704_v22 }
  0x54   :  { %v361_v48 = vrot.slane %v360_v33, 2  ;;  %v398_v49 = vadd.f32 %v397_v34, %v395_v5  ;;  %v345_v53 = vrot.slane %v344_v39, 1  ;;  %v429_v31 = vmul.f32 %v772_v12, %v706_v23 }
  0x55   :  { %v382_v54 = vadd.f32 %v381_v40, %v380_v26  ;;  %v415_v17 = vadd.f32 %v414_v46, %v412_v37  ;;  %329 = vst [vmem:[#allocation5 + $0xf] sm:$0x1] %v328_v47  ;;  %v430_v13 = vmul.f32 %v776_v21, %v708_v24  ;;  %v431_v0 = vmul.f32 %v778_v32, %v710_v25 }
  0x56   :  { %v362_v10 = vadd.f32 %v361_v48, %v360_v33  ;;  %v399_v55 = vrot.slane %v398_v49, 4  ;;  %v346_v58 = vadd.f32 %v345_v53, %v344_v39  ;;  %v432_v56 = vadd.f32 %v429_v31, %v428_v42 }
  0x57   :  { %v383_v14 = vrot.slane %v382_v54, 2  ;;  %v416_v59 = vadd.f32 %v415_v17, %v413_v41  ;;  %v450_v60 = vmul.f32 %v734_v38, %v718_v29  ;;  %v451_v23 = vmul.f32 %v742_v43, %v720_v30 }
  0x58   :  { %v363_v22 = vrot.slane %v362_v10, 1  ;;  %v400_v15 = vadd.f32 %v399_v55, %v398_v49  ;;  %347 = vst [vmem:[#allocation5 + $0x10] sm:$0x1] %v346_v58  ;;  %v433_v63 = vadd.f32 %v432_v56, %v430_v13  ;;  %v452_v24 = vmul.f32 %v744_v44, %v728_v35 }
  0x59   :  { %v384_v61 = vadd.f32 %v383_v14, %v382_v54  ;;  %v417_v1 = vrot.slane %v416_v59, 4  ;;  %v453_v9 = vmul.f32 %v746_v45, %v730_v36  ;;  %v454_v4 = vadd.f32 %v451_v23, %v450_v60 }
  0x5a   :  { %v364_v25 = vadd.f32 %v363_v22, %v362_v10  ;;  %v401_v8 = vrot.slane %v400_v15, 2  ;;  %v434_v16 = vadd.f32 %v433_v63, %v431_v0  ;;  %v468_v5 = vmul.f32 %v752_v50, %v718_v29 }
  0x5b   :  { %v385_v2 = vrot.slane %v384_v61, 1  ;;  %v418_v11 = vadd.f32 %v417_v1, %v416_v59  ;;  %v455_v6 = vadd.f32 %v454_v4, %v452_v24  ;;  %v469_v3 = vmul.f32 %v754_v51, %v720_v30 }
  0x5c   :  { %365 = vst [vmem:[#allocation5 + $0x11] sm:$0x1] %v364_v25  ;;  %v402_v18 = vadd.f32 %v401_v8, %v400_v15  ;;  %v470_v19 = vmul.f32 %v756_v52, %v728_v35  ;;  %v435_v20 = vrot.slane %v434_v16, 4  ;;  %v471_v27 = vmul.f32 %v762_v57, %v730_v36 }
  0x5d   :  { %v386_v7 = vadd.f32 %v385_v2, %v384_v61  ;;  %v419_v26 = vrot.slane %v418_v11, 2  ;;  %v456_v33 = vadd.f32 %v455_v6, %v453_v9  ;;  %v472_v34 = vadd.f32 %v469_v3, %v468_v5 }
  0x5e   :  { %v403_v28 = vrot.slane %v402_v18, 1  ;;  %v486_v37 = vmul.f32 %v766_v62, %v718_v29  ;;  %v436_v40 = vadd.f32 %v435_v20, %v434_v16  ;;  %v487_v41 = vmul.f32 %v772_v12, %v720_v30 }
  0x5f   :  { %387 = vst [vmem:[#allocation5 + $0x12] sm:$0x1] %v386_v7  ;;  %v420_v39 = vadd.f32 %v419_v26, %v418_v11  ;;  %v488_v46 = vmul.f32 %v776_v21, %v728_v35  ;;  %v457_v48 = vrot.slane %v456_v33, 4  ;;  %v473_v49 = vadd.f32 %v472_v34, %v470_v19 }
  0x60   :  { %v404_v47 = vadd.f32 %v403_v28, %v402_v18  ;;  %v489_v42 = vmul.f32 %v778_v32, %v730_v36  ;;  %v437_v54 = vrot.slane %v436_v40, 2  ;;  %v490_v17 = vadd.f32 %v487_v41, %v486_v37 }
  0x61   :  { %v421_v53 = vrot.slane %v420_v39, 1  ;;  %v508_v29 = vmul.f32 %v752_v50, %v734_v38  ;;  %v458_v31 = vadd.f32 %v457_v48, %v456_v33  ;;  %v474_v10 = vadd.f32 %v473_v49, %v471_v27 }
  0x62   :  { %405 = vst [vmem:[#allocation5 + $0x13] sm:$0x1] %v404_v47  ;;  %v509_v30 = vmul.f32 %v754_v51, %v742_v43  ;;  %v510_v35 = vmul.f32 %v756_v52, %v744_v44  ;;  %v438_v13 = vadd.f32 %v437_v54, %v436_v40  ;;  %v491_v0 = vadd.f32 %v490_v17, %v488_v46 }
  0x63   :  { %v422_v55 = vadd.f32 %v421_v53, %v420_v39  ;;  %v511_v36 = vmul.f32 %v762_v57, %v746_v45  ;;  %v459_v58 = vrot.slane %v458_v31, 2  ;;  %v475_v14 = vrot.slane %v474_v10, 4 }
  0x64   :  { %v512_v59 = vadd.f32 %v509_v30, %v508_v29  ;;  %v526_v56 = vmul.f32 %v766_v62, %v734_v38  ;;  %v439_v22 = vrot.slane %v438_v13, 1  ;;  %v492_v15 = vadd.f32 %v491_v0, %v489_v42 }
  0x65   :  { %423 = vst [vmem:[#allocation5 + $0x14] sm:$0x1] %v422_v55  ;;  %v527_v60 = vmul.f32 %v772_v12, %v742_v43  ;;  %v528_v23 = vmul.f32 %v776_v21, %v744_v44  ;;  %v460_v61 = vadd.f32 %v459_v58, %v458_v31  ;;  %v476_v1 = vadd.f32 %v475_v14, %v474_v10 }
  0x66   :  { %v513_v63 = vadd.f32 %v512_v59, %v510_v35  ;;  %v529_v24 = vmul.f32 %v778_v32, %v746_v45  ;;  %v440_v25 = vadd.f32 %v439_v22, %v438_v13  ;;  %v493_v8 = vrot.slane %v492_v15, 4 }
  0x67   :  { %v530_v9 = vadd.f32 %v527_v60, %v526_v56  ;;  %v548_v38 = vmul.f32 %v766_v62, %v752_v50  ;;  %v461_v4 = vrot.slane %v460_v61, 1  ;;  %v477_v2 = vrot.slane %v476_v1, 2 }
  0x68   :  { %v514_v11 = vadd.f32 %v513_v63, %v511_v36  ;;  %v549_v43 = vmul.f32 %v772_v12, %v754_v51  ;;  %441 = vst [vmem:[#allocation5 + $0x15] sm:$0x1] %v440_v25  ;;  %v494_v44 = vadd.f32 %v493_v8, %v492_v15  ;;  %v550_v5 = vmul.f32 %v776_v21, %v756_v52 }
  0x69   :  { %v531_v16 = vadd.f32 %v530_v9, %v528_v23  ;;  %v551_v45 = vmul.f32 %v778_v32, %v762_v57  ;;  %v462_v18 = vadd.f32 %v461_v4, %v460_v61  ;;  %v478_v6 = vadd.f32 %v477_v2, %v476_v1 }
  0x6a   :  { %v515_v3 = vrot.slane %v514_v11, 4  ;;  %v552_v19 = vadd.f32 %v549_v43, %v548_v38  ;;  %v495_v50 = vrot.slane %v494_v44, 2 }
  0x6b   :  { %v532_v62 = vadd.f32 %v531_v16, %v529_v24  ;;  %463 = vst [vmem:[#allocation5 + $0x16] sm:$0x1] %v462_v18  ;;  %v479_v7 = vrot.slane %v478_v6, 1 }
  0x6c   :  { %v516_v26 = vadd.f32 %v515_v3, %v514_v11  ;;  %v553_v20 = vadd.f32 %v552_v19, %v550_v5  ;;  %v496_v51 = vadd.f32 %v495_v50, %v494_v44 }
  0x6d   :  { %v533_v12 = vrot.slane %v532_v62, 4  ;;  %v480_v27 = vadd.f32 %v479_v7, %v478_v6 }
  0x6e   :  { %v517_v28 = vrot.slane %v516_v26, 2  ;;  %v554_v33 = vadd.f32 %v553_v20, %v551_v45  ;;  %v497_v34 = vrot.slane %v496_v51, 1 }
  0x6f   :  { %v534_v52 = vadd.f32 %v533_v12, %v532_v62  ;;  %481 = vst [vmem:[#allocation5 + $0x17] sm:$0x1] %v480_v27 }
  0x70   :  { %v518_v21 = vadd.f32 %v517_v28, %v516_v26  ;;  %v555_v57 = vrot.slane %v554_v33, 4  ;;  %v498_v32 = vadd.f32 %v497_v34, %v496_v51 }
  0x71   :  { %v535_v37 = vrot.slane %v534_v52, 2 }
  0x72   :  { %v519_v39 = vrot.slane %v518_v21, 1  ;;  %v556_v40 = vadd.f32 %v555_v57, %v554_v33  ;;  %499 = vst [vmem:[#allocation5 + $0x18] sm:$0x1] %v498_v32 }
  0x73   :  { %v536_v41 = vadd.f32 %v535_v37, %v534_v52 }
  0x74   :  { %v520_v46 = vadd.f32 %v519_v39, %v518_v21  ;;  %v557_v47 = vrot.slane %v556_v40, 2 }
  0x75   :  { %v537_v48 = vrot.slane %v536_v41, 1 }
  0x76   :  { %521 = vst [vmem:[#allocation5 + $0x19] sm:$0x1] %v520_v46  ;;  %v558_v49 = vadd.f32 %v557_v47, %v556_v40 }
  0x77   :  { %v538_v42 = vadd.f32 %v537_v48, %v536_v41 }
  0x78   :  { %v559_v53 = vrot.slane %v558_v49, 1 }
  0x79   :  { %539 = vst [vmem:[#allocation5 + $0x1a] sm:$0x1] %v538_v42 }
  0x7a   :  { %v560_v54 = vadd.f32 %v559_v53, %v558_v49 }
  0x7c   :  { %561 = vst [vmem:[#allocation5 + $0x1b] sm:$0x1] %v560_v54 }
  0x7d   :  { %616 = shalt.err (!%p613_p12)
}
  0x7e   :  { %s617_s24 = scalar_lea.hbm %s970_s1, 512 }
  0x7f   :  { %p618_p13 = scmp.ne.s32.totalorder %s970_s1, %s617_s24  ;;  %p621_p0 = scmp.lt.u32.totalorder %s617_s24, %s970_s1 }
  0x81   :  { %p623_p1 = pnand %p621_p0, %p618_p13 }
  0x83   :  { %626 = shalt.err (!%p623_p1)
}
  0x84   :  { %573 = dma.vmem_to_hbm [thread:$0]  %s568_s20, 512, %s970_s1, [#allocation4], %s632_s16, %s632_s16, %s633_s17  }
  0x85   :  { %629 = dma.done.wait [#allocation4], 512  }
  0x86   :  { %630 = vsyncadd [#allocation4], 4294966784 }
  0x87   :  { %577 = vsyncpa [#allocation3], 1 }
  0x88   :  { %578 = vsyncpa [#allocation4], 1 }

</bundles_post_ra>
